<compile_context>
chip_gen: v5e
topology: v5e:2x2
jax: 0.10.0
libtpu: 0.0.40
codegen_flags: <defaults>
</compile_context>

<pallas_src>
import jax
import jax.numpy as jnp
from jax import lax
from jax.experimental import pallas as pl
from jax.experimental.pallas import tpu as pltpu


def _round_up(x, m):
    return ((x + m - 1) // m) * m


# ---------------------------------------------------------------------------
# Path A: small/medium vocabulary — one-hot MXU gather, vocab axis tiled.
# ---------------------------------------------------------------------------
def _onehot_gather_kernel(idx_ref, tab_ref, out_ref, acc_ref):
    """idx_ref: (TR, 1) int32        row indices for this row tile
       tab_ref: (VK, 3*D) bf16       vocab chunk k of the hi|mid|lo split table
       out_ref: (TR, D)              gathered rows (written at last vocab chunk)
       acc_ref: (TR, D) f32 scratch  accumulator across vocab chunks"""
    k = pl.program_id(1)

    @pl.when(k == 0)
    def _():
        acc_ref[...] = jnp.zeros_like(acc_ref)

    tr = idx_ref.shape[0]
    vk = tab_ref.shape[0]
    d = acc_ref.shape[1]

    lane = lax.broadcasted_iota(jnp.int32, (tr, vk), 1)
    local = idx_ref[...] - k * vk                      # ids local to this vocab chunk
    onehot = (lane == local).astype(jnp.bfloat16)      # 0/1, exact in bf16

    # One bf16 MXU pass over the concatenated hi|mid|lo table; each output
    # element receives exactly one nonzero product, so the gather is exact per
    # piece and hi+mid+lo reconstructs the f32 row to ~2^-23 relative.
    g = jnp.dot(onehot, tab_ref[...], preferred_element_type=jnp.float32)  # (tr, 3d)
    acc_ref[...] += g[:, :d] + g[:, d:2 * d] + g[:, 2 * d:3 * d]

    @pl.when(k == pl.num_programs(1) - 1)
    def _():
        out_ref[...] = acc_ref[...].astype(out_ref.dtype)


def _split3_and_pad_table(table, vk):
    """f32 (V, D) -> zero-padded bf16 (round_up(V, vk), 3*D) = hi | mid | lo."""
    v, d = table.shape
    vpad = _round_up(v, vk)
    hi = table.astype(jnp.bfloat16)
    r1 = table - hi.astype(jnp.float32)
    mid = r1.astype(jnp.bfloat16)
    lo = (r1 - mid.astype(jnp.float32)).astype(jnp.bfloat16)
    packed = jnp.concatenate([hi, mid, lo], axis=1)
    return jnp.pad(packed, ((0, vpad - v), (0, 0)))


def _lookup_onehot_mxu(flat_idx, tab_split, vk, d, out_dtype, *, max_rows_per_tile=256):
    n = flat_idx.shape[0]
    vpad = tab_split.shape[0]

    tr = min(_round_up(max_rows_per_tile, 8), _round_up(max(n, 1), 8))
    npad = _round_up(max(n, 1), tr)
    idx2 = jnp.pad(flat_idx, (0, npad - n)).reshape(npad, 1)

    grid = (npad // tr, vpad // vk)
    out = pl.pallas_call(
        _onehot_gather_kernel,
        out_shape=jax.ShapeDtypeStruct((npad, d), out_dtype),
        grid=grid,
        in_specs=[
            pl.BlockSpec((tr, 1), lambda i, k: (i, 0)),
            pl.BlockSpec((vk, 3 * d), lambda i, k: (k, 0)),
        ],
        out_specs=pl.BlockSpec((tr, d), lambda i, k: (i, 0)),
        scratch_shapes=[pltpu.VMEM((tr, d), jnp.float32)],
        compiler_params=pltpu.CompilerParams(
            dimension_semantics=("parallel", "arbitrary"),
        ),
        cost_estimate=pl.CostEstimate(
            flops=2 * npad * vpad * 3 * d,
            transcendentals=0,
            bytes_accessed=npad * 4 + grid[0] * vpad * 3 * d * 2 + npad * d * 4,
        ),
    )(idx2, tab_split)
    return out[:n]


# ---------------------------------------------------------------------------
# Path B: large vocabulary — table stays in HBM; CHUNK rows gathered per grid
# step with a manual double-buffered DMA pipeline (prefetch next chunk while
# waiting on / writing back the current one).
# ---------------------------------------------------------------------------
def _hbm_gather_kernel(idx_ref, tab_hbm, out_ref, buf, sems):
    """idx_ref: SMEM (N_pad,) int32 (scalar-prefetched row indices)
       tab_hbm: HBM (V, D) embedding table (memory_space=ANY)
       out_ref: (CHUNK, D) VMEM output block
       buf:     (2*CHUNK, D) VMEM double buffer
       sems:    (2*CHUNK,) DMA semaphores (one per in-flight row copy)"""
    s = pl.program_id(0)
    nsteps = pl.num_programs(0)
    chunk, _ = out_ref.shape

    def fetch(step, slot_off):
        base = step * chunk

        @pl.loop(0, chunk)
        def _(r):
            row = idx_ref[base + r]
            pltpu.make_async_copy(
                tab_hbm.at[row], buf.at[slot_off + r], sems.at[slot_off + r]
            ).start()

    slot = s & 1
    slot_off = slot * chunk

    @pl.when(s == 0)
    def _():
        fetch(0, 0)                       # prime slot 0

    @pl.when(s + 1 < nsteps)
    def _():
        fetch(s + 1, (1 - slot) * chunk)  # prefetch next chunk into the other slot

    @pl.loop(0, chunk)                    # wait for this chunk's row DMAs
    def _(r):
        pltpu.make_async_copy(
            tab_hbm.at[0], buf.at[slot_off + r], sems.at[slot_off + r]
        ).wait()

    out_ref[...] = buf[pl.ds(pl.multiple_of(slot_off, chunk), chunk), :]


def _lookup_hbm_gather(flat_idx, table, *, chunk=32, max_idx_per_call=32768):
    """Only the gathered rows ever reach VMEM; indices live in SMEM."""
    v, d = table.shape
    n = flat_idx.shape[0]

    if n > max_idx_per_call:
        # Bound the SMEM footprint of the scalar-prefetched index slab
        # (1D s32[N] pads to next_pow2(4N) bytes).
        parts = [
            _lookup_hbm_gather(flat_idx[i:i + max_idx_per_call], table, chunk=chunk)
            for i in range(0, n, max_idx_per_call)
        ]
        return jnp.concatenate(parts, axis=0)

    chunk = min(chunk, _round_up(max(n, 1), 8))
    npad = _round_up(max(n, 1), chunk)
    idx_pad = jnp.pad(flat_idx, (0, npad - n))  # pads with row 0 (valid)

    out = pl.pallas_call(
        _hbm_gather_kernel,
        out_shape=jax.ShapeDtypeStruct((npad, d), table.dtype),
        grid_spec=pltpu.PrefetchScalarGridSpec(
            num_scalar_prefetch=1,
            grid=(npad // chunk,),
            in_specs=[pl.BlockSpec(memory_space=pl.ANY)],
            out_specs=pl.BlockSpec((chunk, d), lambda s, idx: (s, 0)),
            scratch_shapes=[
                pltpu.VMEM((2 * chunk, d), table.dtype),
                pltpu.SemaphoreType.DMA((2 * chunk,)),
            ],
        ),
        # "arbitrary": the double-buffer priming/prefetch carries state across
        # consecutive grid steps, so the axis must stay sequential.
        compiler_params=pltpu.CompilerParams(dimension_semantics=("arbitrary",)),
        cost_estimate=pl.CostEstimate(
            flops=0,
            transcendentals=0,
            bytes_accessed=npad * 4 + 2 * npad * d * table.dtype.itemsize,
        ),
    )(idx_pad, table)
    return out[:n]


# ---------------------------------------------------------------------------
# Module port
# ---------------------------------------------------------------------------
class UserResidualBlockPallas:
    """JAX/Pallas port of models/double_decoder.py::UserResidualBlock."""

    # Beyond this vocab size the one-hot path's per-row-tile table re-read
    # dominates; fall back to the HBM row-gather path.
    _MXU_VOCAB_LIMIT = 8192

    def __init__(self, embedding_dim, n_users, padding_idx, key):
        self.embedding_dim = embedding_dim
        self.n_users = n_users
        self.padding_idx = padding_idx
        self.vocab = n_users + 3

        k_emb, k_w, k_b = jax.random.split(key, 3)
        # torch.nn.Embedding: N(0, 1) init, padding_idx row zeroed.
        emb = jax.random.normal(k_emb, (self.vocab, embedding_dim), jnp.float32)
        emb = emb.at[padding_idx].set(0.0)
        self.embedding = emb

        # torch.nn.Linear(embedding_dim, embedding_dim) params (unused by forward).
        bound = 1.0 / (embedding_dim ** 0.5)
        self.dense_w = jax.random.uniform(
            k_w, (embedding_dim, embedding_dim), jnp.float32, -bound, bound)
        self.dense_b = jax.random.uniform(
            k_b, (embedding_dim,), jnp.float32, -bound, bound)

        # Fast-path setup: cache the bf16 hi/mid/lo split table once (not per call).
        self._vk = min(512, _round_up(self.vocab, 128))
        self._use_mxu = self.vocab <= self._MXU_VOCAB_LIMIT
        if self._use_mxu:
            self._emb_split = _split3_and_pad_table(emb, self._vk)

    def forward(self, x):
        lead = x.shape
        flat = x.reshape(-1).astype(jnp.int32)
        # TODO(synk): torch.nn.Embedding raises on out-of-range ids; we clamp so an
        # invalid id cannot read a neighbouring row or fault the HBM DMA.
        flat = jnp.clip(flat, 0, self.vocab - 1)

        if self._use_mxu:
            out = _lookup_onehot_mxu(
                flat, self._emb_split, self._vk, self.embedding_dim, jnp.float32)
        else:
            out = _lookup_hbm_gather(flat, self.embedding)

        # TODO(synk): the reference forward body ends after `h = self.embedding(x)`
        # (implicitly returns None, self.dense unused); we return h so the kernel
        # result is observable.
        return out.reshape(*lead, self.embedding_dim)


if __name__ == "__main__":
    key = jax.random.PRNGKey(0)
    k_param, k_idx = jax.random.split(key)

    embedding_dim, n_users, padding_idx = 32, 10, 0
    block = UserResidualBlockPallas(embedding_dim, n_users, padding_idx, k_param)

    B, S = 2, 8
    x = jax.random.randint(k_idx, (B, S), 0, n_users + 3, dtype=jnp.int32)

    ref = jnp.take(block.embedding, x.reshape(-1), axis=0).reshape(B, S, embedding_dim)

    # Fast path: vocab-tiled one-hot MXU gather (bf16 hi/mid/lo split, f32 accumulate).
    h = jax.block_until_ready(block.forward(x))
    assert h.shape == (B, S, embedding_dim)
    assert jnp.allclose(h, ref, rtol=1e-5, atol=1e-5), "one-hot MXU path mismatch"

    # Scalable fallback: HBM-resident table, chunked double-buffered row-DMA gather.
    h2 = _lookup_hbm_gather(x.reshape(-1).astype(jnp.int32), block.embedding)
    h2 = jax.block_until_ready(h2).reshape(B, S, embedding_dim)
    assert jnp.allclose(h2, ref), "hbm gather path mismatch"

    print("KERNEL_OK")
</pallas_src>

<mosaic_0001>
module attributes {stable_mosaic.version = 11 : i64} {
  func.func @_onehot_gather_kernel(%arg0: i32, %arg1: i32, %arg2: memref<16x1xi32, #tpu.memory_space<vmem>>, %arg3: memref<128x96xbf16, #tpu.memory_space<vmem>>, %arg4: memref<16x32xf32, #tpu.memory_space<vmem>>, %arg5: memref<16x32xf32, #tpu.memory_space<vmem>>) attributes {dimension_semantics = [#tpu.dimension_semantics<parallel>, #tpu.dimension_semantics<arbitrary>], iteration_bounds = array<i64: 1, 1>, scalar_prefetch = 0 : i64, scratch_operands = 1 : i64, tpu.core_type = #tpu.core_type<tc>, window_params = [{transform_indices = @transform_0, window_bounds = array<i64: 16, 1>}, {transform_indices = @transform_1, window_bounds = array<i64: 128, 96>}, {transform_indices = @transform_2, window_bounds = array<i64: 16, 32>}]} {
    %c0_i32 = arith.constant 0 : i32
    %0 = arith.cmpi eq, %arg1, %c0_i32 : i32
    %1 = arith.extui %0 : i1 to i32
    %c0_i32_0 = arith.constant 0 : i32
    %2 = arith.cmpi ne, %1, %c0_i32_0 : i32
    scf.if %2 {
      %cst_10 = arith.constant 0.000000e+00 : f32
      %26 = vector.broadcast %cst_10 : f32 to vector<16x32xf32>
      %c0_11 = arith.constant 0 : index
      %c0_12 = arith.constant 0 : index
      %27 = vector.load %arg5[%c0_11, %c0_12] : memref<16x32xf32, #tpu.memory_space<vmem>>, vector<16x32xf32>
      tpu.vector_store %arg5[%c0_11, %c0_12], %26 {strides = array<i32>} : memref<16x32xf32, #tpu.memory_space<vmem>>, vector<16x32xf32>,
    } else {
    }
    %3 = tpu.iota {dimensions = array<i32: 1>} : vector<16x128xi32>
    %c0 = arith.constant 0 : index
    %c0_1 = arith.constant 0 : index
    %4 = vector.load %arg2[%c0, %c0_1] : memref<16x1xi32, #tpu.memory_space<vmem>>, vector<16x1xi32>
    %c128_i32 = arith.constant 128 : i32
    %5 = arith.muli %arg1, %c128_i32 : i32
    %6 = vector.broadcast %5 : i32 to vector<16x1xi32>
    %7 = arith.subi %4, %6 : vector<16x1xi32>
    %8 = vector.broadcast %7 : vector<16x1xi32> to vector<16x128xi32>
    %9 = arith.cmpi eq, %3, %8 : vector<16x128xi32>
    %10 = arith.extui %9 : vector<16x128xi1> to vector<16x128xi32>
    %11 = arith.sitofp %10 : vector<16x128xi32> to vector<16x128xf32>
    %12 = arith.truncf %11 : vector<16x128xf32> to vector<16x128xbf16>
    %c0_2 = arith.constant 0 : index
    %c0_3 = arith.constant 0 : index
    %13 = vector.load %arg3[%c0_2, %c0_3] : memref<128x96xbf16, #tpu.memory_space<vmem>>, vector<128x96xbf16>
    %cst = arith.constant dense<0.000000e+00> : vector<16x96xf32>
    %14 = tpu.matmul %12, %13, %cst {dimension_numbers = #tpu.dot_dimension_numbers<[1], [0], [0], [1], [0, 0, 1, 1], [], []>} : vector<16x128xbf16>, vector<128x96xbf16>, vector<16x96xf32> -> vector<16x96xf32>
    %c0_4 = arith.constant 0 : index
    %c0_5 = arith.constant 0 : index
    %15 = vector.load %arg5[%c0_4, %c0_5] : memref<16x32xf32, #tpu.memory_space<vmem>>, vector<16x32xf32>
    %16 = vector.extract_strided_slice %14 {offsets = [0, 0], sizes = [16, 32], strides = [1, 1]} : vector<16x96xf32> to vector<16x32xf32>
    %17 = vector.extract_strided_slice %14 {offsets = [0, 32], sizes = [16, 32], strides = [1, 1]} : vector<16x96xf32> to vector<16x32xf32>
    %18 = arith.addf %16, %17 : vector<16x32xf32>
    %19 = vector.extract_strided_slice %14 {offsets = [0, 64], sizes = [16, 32], strides = [1, 1]} : vector<16x96xf32> to vector<16x32xf32>
    %20 = arith.addf %18, %19 : vector<16x32xf32>
    %21 = arith.addf %15, %20 : vector<16x32xf32>
    %c0_6 = arith.constant 0 : index
    %c0_7 = arith.constant 0 : index
    %22 = vector.load %arg5[%c0_6, %c0_7] : memref<16x32xf32, #tpu.memory_space<vmem>>, vector<16x32xf32>
    tpu.vector_store %arg5[%c0_6, %c0_7], %21 {strides = array<i32>} : memref<16x32xf32, #tpu.memory_space<vmem>>, vector<16x32xf32>,
    %c0_i32_8 = arith.constant 0 : i32
    %23 = arith.cmpi eq, %arg1, %c0_i32_8 : i32
    %24 = arith.extui %23 : i1 to i32
    %c0_i32_9 = arith.constant 0 : i32
    %25 = arith.cmpi ne, %24, %c0_i32_9 : i32
    scf.if %25 {
      %c0_10 = arith.constant 0 : index
      %c0_11 = arith.constant 0 : index
      %26 = vector.load %arg5[%c0_10, %c0_11] : memref<16x32xf32, #tpu.memory_space<vmem>>, vector<16x32xf32>
      %c0_12 = arith.constant 0 : index
      %c0_13 = arith.constant 0 : index
      %27 = vector.load %arg4[%c0_12, %c0_13] : memref<16x32xf32, #tpu.memory_space<vmem>>, vector<16x32xf32>
      tpu.vector_store %arg4[%c0_12, %c0_13], %26 {strides = array<i32>} : memref<16x32xf32, #tpu.memory_space<vmem>>, vector<16x32xf32>,
    } else {
    }
    return
  }
  func.func @transform_0(%arg0: i32, %arg1: i32) -> (i32, i32) {
    %c0_i32 = arith.constant 0 : i32
    %c0_i32_0 = arith.constant 0 : i32
    return %arg0, %c0_i32 : i32, i32
  }
  func.func @transform_1(%arg0: i32, %arg1: i32) -> (i32, i32) {
    %c0_i32 = arith.constant 0 : i32
    %c0_i32_0 = arith.constant 0 : i32
    return %arg1, %c0_i32 : i32, i32
  }
  func.func @transform_2(%arg0: i32, %arg1: i32) -> (i32, i32) {
    %c0_i32 = arith.constant 0 : i32
    %c0_i32_0 = arith.constant 0 : i32
    return %arg0, %c0_i32 : i32, i32
  }
}

</mosaic_0001>

<bundles_post_ra>
// kernel: tpu_custom_call.1
= control target key start
LH: loop header
LB: loop body
LE: loop exit
PB: predicated region body
PF: predicated region fallthrough
CT: control target
= control target key end

     0   :  { %v247_v2 = vmov 0   ;;  %s309_s0 = inlined_call_operand.vmem [shape: s32[16,1], index: 0, kind: input, shape index: {}]   ;;  %s310_s1 = inlined_call_operand.vmem [shape: bf16[128,96], index: 1, kind: input, shape index: {}]   ;;  %s311_s2 = inlined_call_operand.hbm [shape: f32[16,32], index: 2, kind: output, shape index: {}]  }
   0x1   :  { %v21_v0 = vld [vmem:[%s309_s0] sm:$0xff]  ;;  %v211_v1 = vld [vmem:[%s310_s1 + $0x38] sm:$0xff]  ;;  %220 = vset.pattern.permute.xlu0 %v247_v2  ;;  %v210_v3 = vld [vmem:[%s310_s1 + $0x30] sm:$0xff] }
   0x2   :  { %28 = vperm.xlu0 %220, %v21_v0   ;;  %104 = vmatpush.bf16.msra.mxu0 %v211_v1 }
   0x3   :  { %7 = vsyncpa [#allocation4], 0  ;;  %v209_v4 = vld [vmem:[%s310_s1 + $0x28] sm:$0xff]  ;;  %v208_v6 = vld [vmem:[%s310_s1 + $0x20] sm:$0xff]  ;;  %v19_v12 = vlaneseq  ;;  %v248_v15 = vmov 1.0|1.0  }
   0x4   :  { %v22_v5 = vld [vmem:[%s309_s0 + $0x8] sm:$0xff]  ;;  %v207_v7 = vld [vmem:[%s310_s1 + $0x18] sm:$0xff]  ;;  %v206_v8 = vld [vmem:[%s310_s1 + $0x10] sm:$0xff]  ;;  %s249_s28 = smov 64   ;;  %s250_s29 = smov 96   ;;  %vm16_vm3 = vcmask 261120  }
   0x5   :  { %v205_v9 = vld [vmem:[%s310_s1 + $0x8] sm:$0xff]  ;;  %v204_v10 = vld [vmem:[%s310_s1] sm:$0xff]  ;;  %v20_v13 = vand.u32 127, %v19_v12  ;;  %v251_v18 = vmov 0.0   ;;  %s252_s1 = smov [#allocation3]   ;;  %s156_s5 = sshll.u32 %s311_s2, 4  ;;  %s157_s5 = int_to_ptr.hbm [resolvable:$true] %s156_s5 }
   0x6   :  { %105 = vmatpush.bf16.msra.mxu0 %v210_v3  ;;  %17 = vst.msk [vmem:[#allocation2] sm:$0xff] %vm16_vm3, %v251_v18  ;;  %s154_s30 = sshll.u32 %s252_s1, 4  ;;  %s253_s6 = smov 128   ;;  %s155_s30 = int_to_ptr.vmem [resolvable:$true] %s154_s30 }
   0x7   :  { %18 = vst.msk [vmem:[#allocation2 + $0x8] sm:$0xff] %vm16_vm3, %v251_v18  ;;  %s254_s7 = smov 8  }
   0xa   :  { %31 = vperm.xlu0 %220, %v22_v5   ;;  %106 = vmatpush.bf16.msra.mxu0 %v209_v4 }
   0xd   :  { %v118_v22 = vld [vmem:[#allocation2] sm:$0xff] }
   0xe   :  { %107 = vmatpush.bf16.msra.mxu0 %v208_v6  ;;  %v119_v28 = vld [vmem:[#allocation2 + $0x8] sm:$0xff] }
  0x12   :  { %108 = vmatpush.bf16.msra.mxu0 %v207_v7 }
  0x16   :  { %109 = vmatpush.bf16.msra.mxu0 %v206_v8 }
  0x1a   :  { %110 = vmatpush.bf16.msra.mxu0 %v205_v9 }
  0x1e   :  { %111 = vmatpush.bf16.msra.mxu0 %v204_v10 }
  0x74   :  { %v29_v11 = vpop.permute.xlu0 %28 }
  0x75   :  { %vm33_vm0 = vcmp.eq.s32.totalorder %v20_v13, %v29_v11 }
  0x7c   :  { %v32_v14 = vpop.permute.xlu0 %31 }
  0x7d   :  { %vm34_vm1 = vcmp.eq.s32.totalorder %v20_v13, %v32_v14 }
  0x7e   :  { %vm202_vm2 = vmpackc.low %vm34_vm1, %vm33_vm0 }
  0x7f   :  { %203 = vmatmul.msk.bf16.vlgmr.msra.gmra.mxu0 %vm202_vm2, %v248_v15 }
  0xfc   :  { %v113_v16 = vpop.f32.mrf.mxu0 }
  0xfd   :  { %130 = vrot.lane.b32.xlu2 %v113_v16, %s249_s28  ;;  %122 = vrot.lane.b32.xlu1 %v113_v16, %s250_s29 }
 0x104   :  { %v115_v17 = vpop.f32.mrf.mxu0 }
 0x105   :  { %132 = vrot.lane.b32.xlu2 %v115_v17, %s249_s28  ;;  %124 = vrot.lane.b32.xlu1 %v115_v17, %s250_s29 }
 0x157   :  { %v131_v19 = vpop.permute.xlu2 %130 }
 0x15f   :  { %v133_v27 = vpop.permute.xlu2 %132 }
 0x16f   :  { %v123_v20 = vpop.permute.xlu1 %122 }
 0x170   :  { %v128_v21 = vadd.f32 %v123_v20, %v113_v16 }
 0x172   :  { %v136_v23 = vadd.f32 %v131_v19, %v128_v21 }
 0x174   :  { %v138_v24 = vadd.f32 %v136_v23, %v118_v22 }
 0x176   :  { %141 = vst.msk [vmem:[#allocation2] sm:$0xff] %vm16_vm3, %v138_v24 }
 0x177   :  { %v125_v25 = vpop.permute.xlu1 %124 }
 0x178   :  { %v129_v26 = vadd.f32 %v125_v25, %v115_v17 }
 0x17a   :  { %v137_v29 = vadd.f32 %v133_v27, %v129_v26 }
 0x17c   :  { %v139_v30 = vadd.f32 %v137_v29, %v119_v28 }
 0x17d   :  { %v146_v31 = vld [vmem:[#allocation2] sm:$0xff] }
 0x17e   :  { %142 = vst.msk [vmem:[#allocation2 + $0x8] sm:$0xff] %vm16_vm3, %v139_v30 }
 0x17f   :  { %148 = vst.msk [vmem:[#allocation3] sm:$0xff] %vm16_vm3, %v146_v31 }
 0x185   :  { %v147_v32 = vld [vmem:[#allocation2 + $0x8] sm:$0xff] }
 0x186   :  { %149 = vst.msk [vmem:[#allocation3 + $0x8] sm:$0xff] %vm16_vm3, %v147_v32 }
 0x187   :  { %162 = dma.vmem_to_hbm [thread:$0]  %s155_s30, 256, %s157_s5, [#allocation4], %s253_s6, %s253_s6, %s254_s7  }
 0x188   :  { %245 = dma.done.wait [#allocation4], 256  }
 0x189   :  { %246 = vsyncadd [#allocation4], 4294967040 }
 0x18a   :  { %167 = vsyncpa [#allocation4], 1 }

</bundles_post_ra>
